<compile_context>
chip_gen: v5e
topology: v5e:2x2
jax: 0.10.0
libtpu: 0.0.40
codegen_flags: <defaults>
</compile_context>

<pallas_src>
import functools

import jax
import jax.numpy as jnp
from jax.experimental import pallas as pl
from jax.experimental.pallas import tpu as pltpu


_LANE = 128
_MAX_SPATIAL_TILE = 32768          # lanes per tile in the tiled path
_VMEM_BUDGET = 32 * 1024 * 1024    # conservative: fits v5e/v6e/v7x scoped VMEM


def _round_up(x, m):
    return ((x + m - 1) // m) * m


def _vmem_limit(buffer_bytes):
    # Actual pipelined-buffer need + margin, clamped so it stays sane on v7x.
    return int(min(max(buffer_bytes + 2 * 1024 * 1024, 4 * 1024 * 1024),
                   48 * 1024 * 1024))


def _attention_from_pooled(pooled, w1_ref, b1_ref, w2_ref, b2_ref):
    """softmax(C) -> 1x1 conv -> ReLU -> 1x1 conv -> sigmoid, on a (C, 1) pool."""
    # Softmax over the channel (sublane) axis.
    m = jnp.max(pooled, axis=0, keepdims=True)
    e = jnp.exp(pooled - m)
    # Exact reciprocal: this runs once per batch image, entirely inside the DMA
    # shadow, so the approx EUP variant buys nothing and would cost accuracy.
    s = e * pl.reciprocal(jnp.sum(e, axis=0, keepdims=True), approx=False)

    c = w1_ref.shape[1]
    if c >= 128:
        # Big channel counts: run the two matvecs on the MXU.
        y1 = jnp.dot(w1_ref[...], s, preferred_element_type=jnp.float32) + b1_ref[...]
        y1 = jnp.maximum(y1, 0.0)
        y2 = jnp.dot(w2_ref[...], y1, preferred_element_type=jnp.float32) + b2_ref[...]
    else:
        # Tiny matvecs: broadcast-mul + reduce on the VPU/XLU (below MXU tiles).
        y1 = jnp.sum(w1_ref[...] * s.T, axis=-1, keepdims=True) + b1_ref[...]
        y1 = jnp.maximum(y1, 0.0)
        y2 = jnp.sum(w2_ref[...] * y1.T, axis=-1, keepdims=True) + b2_ref[...]
    return jax.nn.sigmoid(y2)                                    # (C, 1)


# ---------------------------------------------------------------------------
# Fused single-pass kernel: one (1, C, HW_pad) slab per grid step (per batch).
# ---------------------------------------------------------------------------
def _fused_kernel(x_ref, w1_ref, b1_ref, w2_ref, b2_ref, o_ref, *, inv_hw):
    # Global average pool: sum over the zero-padded lane axis, scale by the
    # TRUE 1/(H*W) (padding contributes zero to the sum).
    pooled = jnp.sum(x_ref[0], axis=-1, keepdims=True) * inv_hw  # (C, 1)
    att = _attention_from_pooled(pooled, w1_ref, b1_ref, w2_ref, b2_ref)
    # Re-read the slab from VMEM for the multiply instead of holding the whole
    # (C, HW) value live across the attention math (avoids vreg spills).
    o_ref[0] = (x_ref[0] * att).astype(o_ref.dtype)


# ---------------------------------------------------------------------------
# Two-pass fallback for slabs that do not fit VMEM.
# Pass 1: accumulate the global pool per batch, emit attention at the last tile.
# ---------------------------------------------------------------------------
def _pool_attention_kernel(x_ref, w1_ref, b1_ref, w2_ref, b2_ref, att_ref,
                           acc_ref, *, inv_hw):
    t = pl.program_id(1)

    @pl.when(t == 0)
    def _init():
        acc_ref[...] = jnp.zeros_like(acc_ref)

    # Partial spatial sum of this lane-dense tile (chunked accumulation also
    # improves f32 precision for very large H*W).
    acc_ref[...] += jnp.sum(x_ref[0], axis=-1, keepdims=True)    # (C, 1)

    @pl.when(t == pl.num_programs(1) - 1)
    def _finish():
        pooled = acc_ref[...] * inv_hw
        att_ref[0] = _attention_from_pooled(pooled, w1_ref, b1_ref, w2_ref, b2_ref)


# Pass 2: lane-dense broadcast multiply, both grid axes parallel.
def _multiply_kernel(x_ref, att_ref, o_ref):
    o_ref[0] = (x_ref[0] * att_ref[0]).astype(o_ref.dtype)


def ca_layer(x, w1, b1, w2, b2, *, vmem_budget_bytes=_VMEM_BUDGET):
    """x: (N, C, H, W) float32 (NCHW like PyTorch). Returns the same shape."""
    N, C, H, W = x.shape
    HW = H * W
    inv_hw = 1.0 / float(HW)
    budget = int(vmem_budget_bytes)

    w_bytes = 4 * ((C // 2) * C + (C // 2) + C * (C // 2) + C)
    hw_lane = _round_up(HW, _LANE)                 # lane-dense full slab width
    # Fused path keeps 2 double-buffered input + 2 output (1, C, hw_lane) f32 blocks.
    fused_bytes = 4 * (4 * C * hw_lane) + w_bytes

    if fused_bytes <= budget:
        # -------- Fused single-pass path: whole per-batch slab resident. --------
        hw_pad = hw_lane
        x2 = x.reshape(N, C, HW)
        if hw_pad != HW:
            x2 = jnp.pad(x2, ((0, 0), (0, 0), (0, hw_pad - HW)))

        out = pl.pallas_call(
            functools.partial(_fused_kernel, inv_hw=inv_hw),
            out_shape=jax.ShapeDtypeStruct((N, C, hw_pad), x.dtype),
            grid=(N,),
            in_specs=[
                pl.BlockSpec((1, C, hw_pad), lambda n: (n, 0, 0)),   # x slab
                pl.BlockSpec((C // 2, C), lambda n: (0, 0)),         # w1
                pl.BlockSpec((C // 2, 1), lambda n: (0, 0)),         # b1
                pl.BlockSpec((C, C // 2), lambda n: (0, 0)),         # w2
                pl.BlockSpec((C, 1), lambda n: (0, 0)),              # b2
            ],
            out_specs=pl.BlockSpec((1, C, hw_pad), lambda n: (n, 0, 0)),
            compiler_params=pltpu.CompilerParams(
                dimension_semantics=("parallel",),
                vmem_limit_bytes=_vmem_limit(fused_bytes)),
            cost_estimate=pl.CostEstimate(
                flops=2 * N * C * hw_pad,
                transcendentals=3 * N * C,
                bytes_accessed=2 * N * C * hw_pad * 4),
        )(x2, w1, b1, w2, b2)
    else:
        # -------- Spatially-tiled two-pass path (slab too big for VMEM). --------
        tile = min(budget // (16 * C), _MAX_SPATIAL_TILE, hw_lane)
        tile = max(_LANE, (tile // _LANE) * _LANE)   # lane-dense multiple of 128
        num_tiles = pl.cdiv(HW, tile)
        hw_pad = num_tiles * tile

        x2 = x.reshape(N, C, HW)
        if hw_pad != HW:
            x2 = jnp.pad(x2, ((0, 0), (0, 0), (0, hw_pad - HW)))

        blk = 4 * C * tile
        attn_bytes = 2 * blk + w_bytes + 8 * C
        att = pl.pallas_call(
            functools.partial(_pool_attention_kernel, inv_hw=inv_hw),
            out_shape=jax.ShapeDtypeStruct((N, C, 1), jnp.float32),
            grid=(N, num_tiles),
            in_specs=[
                pl.BlockSpec((1, C, tile), lambda n, t: (n, 0, t)),  # x tile
                pl.BlockSpec((C // 2, C), lambda n, t: (0, 0)),      # w1
                pl.BlockSpec((C // 2, 1), lambda n, t: (0, 0)),      # b1
                pl.BlockSpec((C, C // 2), lambda n, t: (0, 0)),      # w2
                pl.BlockSpec((C, 1), lambda n, t: (0, 0)),           # b2
            ],
            out_specs=pl.BlockSpec((1, C, 1), lambda n, t: (n, 0, 0)),
            scratch_shapes=[pltpu.VMEM((C, 1), jnp.float32)],
            compiler_params=pltpu.CompilerParams(
                dimension_semantics=("parallel", "arbitrary"),
                vmem_limit_bytes=_vmem_limit(attn_bytes)),
            cost_estimate=pl.CostEstimate(
                flops=N * C * hw_pad + 4 * N * C * C,
                transcendentals=3 * N * C,
                bytes_accessed=N * C * hw_pad * 4),
        )(x2, w1, b1, w2, b2)

        mult_bytes = 4 * blk + 8 * C
        out = pl.pallas_call(
            _multiply_kernel,
            out_shape=jax.ShapeDtypeStruct((N, C, hw_pad), x.dtype),
            grid=(N, num_tiles),
            in_specs=[
                pl.BlockSpec((1, C, tile), lambda n, t: (n, 0, t)),  # x tile
                pl.BlockSpec((1, C, 1), lambda n, t: (n, 0, 0)),     # attention
            ],
            out_specs=pl.BlockSpec((1, C, tile), lambda n, t: (n, 0, t)),
            compiler_params=pltpu.CompilerParams(
                dimension_semantics=("parallel", "parallel"),
                vmem_limit_bytes=_vmem_limit(mult_bytes)),
            cost_estimate=pl.CostEstimate(
                flops=N * C * hw_pad,
                transcendentals=0,
                bytes_accessed=(2 * N * C * hw_pad + N * C) * 4),
        )(x2, att)

    if hw_pad != HW:
        out = out[..., :HW]
    return out.reshape(N, C, H, W)


def ca_layer_ref(x, w1, b1, w2, b2):
    """Pure-JAX reference mirroring the PyTorch forward."""
    pooled = jnp.mean(x, axis=(2, 3), keepdims=True)             # (N, C, 1, 1)
    s = jax.nn.softmax(pooled, axis=1)
    y1 = jnp.einsum('oc,nchw->nohw', w1, s) + b1.reshape(1, -1, 1, 1)
    y1 = jax.nn.relu(y1)
    y2 = jnp.einsum('oc,nchw->nohw', w2, y1) + b2.reshape(1, -1, 1, 1)
    att = jax.nn.sigmoid(y2)
    return x * att


if __name__ == "__main__":
    N, C, H, W = 2, 4, 16, 16
    key = jax.random.PRNGKey(0)
    kx, k1, k2, k3, k4 = jax.random.split(key, 5)

    x = jax.random.normal(kx, (N, C, H, W), dtype=jnp.float32)

    # Deterministic parameter init (1x1 conv weights flattened to 2-D, biases 2-D).
    w1 = jax.random.normal(k1, (C // 2, C), dtype=jnp.float32) * (1.0 / jnp.sqrt(C))
    b1 = jax.random.normal(k2, (C // 2, 1), dtype=jnp.float32) * 0.1
    w2 = jax.random.normal(k3, (C, C // 2), dtype=jnp.float32) * (1.0 / jnp.sqrt(C // 2))
    b2 = jax.random.normal(k4, (C, 1), dtype=jnp.float32) * 0.1

    ref = ca_layer_ref(x, w1, b1, w2, b2)

    # Default path: fused single-pass (the whole slab fits the VMEM budget).
    out_fused = jax.block_until_ready(ca_layer(x, w1, b1, w2, b2))
    assert out_fused.shape == (N, C, H, W)
    assert jnp.allclose(out_fused, ref, atol=1e-5, rtol=1e-5), "fused path mismatch"

    # Also exercise the spatially-tiled two-pass fallback (large-image path) by
    # shrinking the budget so the slab no longer "fits".
    out_tiled = jax.block_until_ready(
        ca_layer(x, w1, b1, w2, b2, vmem_budget_bytes=8192))
    assert out_tiled.shape == (N, C, H, W)
    assert jnp.allclose(out_tiled, ref, atol=1e-5, rtol=1e-5), "tiled path mismatch"

    print("KERNEL_OK")
</pallas_src>

<mosaic_0001>
module attributes {stable_mosaic.version = 11 : i64} {
  func.func @_fused_kernel(%arg0: i32, %arg1: memref<1x4x256xf32, #tpu.memory_space<vmem>>, %arg2: memref<2x4xf32, #tpu.memory_space<vmem>>, %arg3: memref<2x1xf32, #tpu.memory_space<vmem>>, %arg4: memref<4x2xf32, #tpu.memory_space<vmem>>, %arg5: memref<4x1xf32, #tpu.memory_space<vmem>>, %arg6: memref<1x4x256xf32, #tpu.memory_space<vmem>>) attributes {dimension_semantics = [#tpu.dimension_semantics<parallel>], iteration_bounds = array<i64: 2>, scalar_prefetch = 0 : i64, scratch_operands = 0 : i64, tpu.core_type = #tpu.core_type<tc>, window_params = [{transform_indices = @transform_0, window_bounds = array<i64: 1, 4, 256>}, {pipeline_mode = #tpu.pipeline_mode<synchronous>, transform_indices = @transform_1, window_bounds = array<i64: 2, 4>}, {pipeline_mode = #tpu.pipeline_mode<synchronous>, transform_indices = @transform_2, window_bounds = array<i64: 2, 1>}, {pipeline_mode = #tpu.pipeline_mode<synchronous>, transform_indices = @transform_3, window_bounds = array<i64: 4, 2>}, {pipeline_mode = #tpu.pipeline_mode<synchronous>, transform_indices = @transform_4, window_bounds = array<i64: 4, 1>}, {transform_indices = @transform_5, window_bounds = array<i64: 1, 4, 256>}]} {
    %c0 = arith.constant 0 : index
    %c0_0 = arith.constant 0 : index
    %c0_1 = arith.constant 0 : index
    %0 = vector.load %arg1[%c0, %c0_0, %c0_1] : memref<1x4x256xf32, #tpu.memory_space<vmem>>, vector<1x4x256xf32>
    %1 = vector.shape_cast %0 : vector<1x4x256xf32> to vector<4x256xf32>
    %cst = arith.constant dense<0.000000e+00> : vector<4xf32>
    %2 = vector.multi_reduction <add>, %1, %cst [1] : vector<4x256xf32> to vector<4xf32>
    %3 = vector.shape_cast %2 : vector<4xf32> to vector<4x1xf32>
    %cst_2 = arith.constant 3.906250e-03 : f32
    %4 = vector.broadcast %cst_2 : f32 to vector<4x1xf32>
    %5 = arith.mulf %3, %4 : vector<4x1xf32>
    %cst_3 = arith.constant dense<0xFF800000> : vector<1xf32>
    %6 = vector.multi_reduction <maximumf>, %5, %cst_3 [0] : vector<4x1xf32> to vector<1xf32>
    %7 = vector.shape_cast %6 : vector<1xf32> to vector<1x1xf32>
    %8 = vector.broadcast %7 : vector<1x1xf32> to vector<4x1xf32>
    %9 = arith.subf %5, %8 : vector<4x1xf32>
    %10 = math.exp %9 : vector<4x1xf32>
    %cst_4 = arith.constant dense<0.000000e+00> : vector<1xf32>
    %11 = vector.multi_reduction <add>, %10, %cst_4 [0] : vector<4x1xf32> to vector<1xf32>
    %12 = vector.shape_cast %11 : vector<1xf32> to vector<1x1xf32>
    %13 = tpu.reciprocal %12 : vector<1x1xf32> -> vector<1x1xf32>
    %14 = vector.broadcast %13 : vector<1x1xf32> to vector<4x1xf32>
    %15 = arith.mulf %10, %14 : vector<4x1xf32>
    %c0_5 = arith.constant 0 : index
    %c0_6 = arith.constant 0 : index
    %16 = vector.load %arg2[%c0_5, %c0_6] : memref<2x4xf32, #tpu.memory_space<vmem>>, vector<2x4xf32>
    %17 = tpu.transpose %15, [1, 0] : vector<4x1xf32> -> vector<1x4xf32>
    %18 = vector.broadcast %17 : vector<1x4xf32> to vector<2x4xf32>
    %19 = arith.mulf %16, %18 : vector<2x4xf32>
    %cst_7 = arith.constant dense<0.000000e+00> : vector<2xf32>
    %20 = vector.multi_reduction <add>, %19, %cst_7 [1] : vector<2x4xf32> to vector<2xf32>
    %21 = vector.shape_cast %20 : vector<2xf32> to vector<2x1xf32>
    %c0_8 = arith.constant 0 : index
    %c0_9 = arith.constant 0 : index
    %22 = vector.load %arg3[%c0_8, %c0_9] : memref<2x1xf32, #tpu.memory_space<vmem>>, vector<2x1xf32>
    %23 = arith.addf %21, %22 : vector<2x1xf32>
    %cst_10 = arith.constant 0.000000e+00 : f32
    %24 = vector.broadcast %cst_10 : f32 to vector<2x1xf32>
    %25 = arith.maximumf %23, %24 : vector<2x1xf32>
    %c0_11 = arith.constant 0 : index
    %c0_12 = arith.constant 0 : index
    %26 = vector.load %arg4[%c0_11, %c0_12] : memref<4x2xf32, #tpu.memory_space<vmem>>, vector<4x2xf32>
    %27 = tpu.transpose %25, [1, 0] : vector<2x1xf32> -> vector<1x2xf32>
    %28 = vector.broadcast %27 : vector<1x2xf32> to vector<4x2xf32>
    %29 = arith.mulf %26, %28 : vector<4x2xf32>
    %cst_13 = arith.constant dense<0.000000e+00> : vector<4xf32>
    %30 = vector.multi_reduction <add>, %29, %cst_13 [1] : vector<4x2xf32> to vector<4xf32>
    %31 = vector.shape_cast %30 : vector<4xf32> to vector<4x1xf32>
    %c0_14 = arith.constant 0 : index
    %c0_15 = arith.constant 0 : index
    %32 = vector.load %arg5[%c0_14, %c0_15] : memref<4x1xf32, #tpu.memory_space<vmem>>, vector<4x1xf32>
    %33 = arith.addf %31, %32 : vector<4x1xf32>
    %34 = arith.negf %33 : vector<4x1xf32>
    %35 = math.exp %34 : vector<4x1xf32>
    %cst_16 = arith.constant 1.000000e+00 : f32
    %36 = vector.broadcast %cst_16 : f32 to vector<4x1xf32>
    %37 = arith.addf %36, %35 : vector<4x1xf32>
    %38 = arith.divf %36, %37 : vector<4x1xf32>
    %c0_17 = arith.constant 0 : index
    %c0_18 = arith.constant 0 : index
    %c0_19 = arith.constant 0 : index
    %39 = vector.load %arg1[%c0_17, %c0_18, %c0_19] : memref<1x4x256xf32, #tpu.memory_space<vmem>>, vector<1x4x256xf32>
    %40 = vector.shape_cast %39 : vector<1x4x256xf32> to vector<4x256xf32>
    %41 = vector.broadcast %38 : vector<4x1xf32> to vector<4x256xf32>
    %42 = arith.mulf %40, %41 : vector<4x256xf32>
    %c0_20 = arith.constant 0 : index
    %c0_21 = arith.constant 0 : index
    %c0_22 = arith.constant 0 : index
    %43 = vector.load %arg6[%c0_20, %c0_21, %c0_22] : memref<1x4x256xf32, #tpu.memory_space<vmem>>, vector<1x4x256xf32>
    %44 = vector.shape_cast %43 : vector<1x4x256xf32> to vector<4x256xf32>
    %45 = vector.shape_cast %42 : vector<4x256xf32> to vector<1x4x256xf32>
    tpu.vector_store %arg6[%c0_20, %c0_21, %c0_22], %45 {strides = array<i32>} : memref<1x4x256xf32, #tpu.memory_space<vmem>>, vector<1x4x256xf32>,
    return
  }
  func.func @transform_0(%arg0: i32) -> (i32, i32, i32) {
    %c0_i32 = arith.constant 0 : i32
    %c0_i32_0 = arith.constant 0 : i32
    %c0_i32_1 = arith.constant 0 : i32
    return %arg0, %c0_i32, %c0_i32_0 : i32, i32, i32
  }
  func.func @transform_1(%arg0: i32) -> (i32, i32) {
    %c0_i32 = arith.constant 0 : i32
    %c0_i32_0 = arith.constant 0 : i32
    %c0_i32_1 = arith.constant 0 : i32
    return %c0_i32, %c0_i32_0 : i32, i32
  }
  func.func @transform_2(%arg0: i32) -> (i32, i32) {
    %c0_i32 = arith.constant 0 : i32
    %c0_i32_0 = arith.constant 0 : i32
    %c0_i32_1 = arith.constant 0 : i32
    return %c0_i32, %c0_i32_0 : i32, i32
  }
  func.func @transform_3(%arg0: i32) -> (i32, i32) {
    %c0_i32 = arith.constant 0 : i32
    %c0_i32_0 = arith.constant 0 : i32
    %c0_i32_1 = arith.constant 0 : i32
    return %c0_i32, %c0_i32_0 : i32, i32
  }
  func.func @transform_4(%arg0: i32) -> (i32, i32) {
    %c0_i32 = arith.constant 0 : i32
    %c0_i32_0 = arith.constant 0 : i32
    %c0_i32_1 = arith.constant 0 : i32
    return %c0_i32, %c0_i32_0 : i32, i32
  }
  func.func @transform_5(%arg0: i32) -> (i32, i32, i32) {
    %c0_i32 = arith.constant 0 : i32
    %c0_i32_0 = arith.constant 0 : i32
    %c0_i32_1 = arith.constant 0 : i32
    return %arg0, %c0_i32, %c0_i32_0 : i32, i32, i32
  }
}

</mosaic_0001>

<bundles_post_ra>
// kernel: tpu_custom_call.1
= control target key start
LH: loop header
LB: loop body
LE: loop exit
PB: predicated region body
PF: predicated region fallthrough
CT: control target
= control target key end

     0   :  { %10 = vsyncpa [#allocation3], 0  ;;  %s846_s0 = inlined_call_operand.hbm [shape: f32[2,4,256], index: 0, kind: input, shape index: {}]   ;;  %s847_s1 = inlined_call_operand.vmem [shape: f32[2,4], index: 1, kind: input, shape index: {}]   ;;  %s848_s2 = inlined_call_operand.vmem [shape: f32[2,1], index: 2, kind: input, shape index: {}]   ;;  %s849_s3 = inlined_call_operand.vmem [shape: f32[4,2], index: 3, kind: input, shape index: {}]   ;;  %s850_s4 = inlined_call_operand.vmem [shape: f32[4,1], index: 4, kind: input, shape index: {}]   ;;  %s851_s5 = inlined_call_operand.hbm [shape: f32[2,4,256], index: 5, kind: output, shape index: {}]  }
   0x1   :  { %12 = vsyncpa [#allocation3 + $0x1], 0 }
   0x2   :  { %13 = vsyncpa [#allocation4], 0 }
   0x3   :  { %15 = vsyncpa [#allocation4 + $0x1], 0  ;;  %s695_s18 = smov 0   ;;  %s697_s19 = smov 0  }
   0x4   :  { %s699_s20 = smov 0   ;;  %s701_s21 = smov 0  }
   0x5 LB: > { %s716_s22 = sadd.s32 4294967295, %s661_s21   ;;  %s489_s23 = sadd.s32 4294967294, %s661_s21   ;;  %s661_s21 = sphi %s701_s21, %s861_s21   ;;  %s657_s20 = sphi %s699_s20, %s860_s20   ;;  %s653_s19 = sphi %s697_s19, %s859_s19   ;;  %s649_s18 = sphi %s695_s18, %s858_s18  }
   0x6   : > { %s720_s24 = sadd.s32 1, %s661_s21   ;;  %s28_s25 = sadd.s32 1, %s657_s20 }
   0x7   : > { %s25_s26 = ssub.s32 %s661_s21, %s720_s24  ;;  %p35_p0 = scmp.ne.s32.totalorder %s657_s20, %s653_s19 }
   0x8   : > { %p26_p1 = scmp.eq.s32.totalorder %s25_s26, 0  ;;  %p36_p2 = scmp.eq.s32.totalorder %s661_s21, 0 }
   0x9   : > { %p41_p3 = scmp.ne.s32.totalorder %s653_s19, %s649_s18  ;;  %p42_p4 = scmp.eq.s32.totalorder %s716_s22, 0 }
   0xa   : > { %s732_s27 = scalar_select %p26_p1, %s657_s20, %s28_s25  }
   0xb   : > { %p734_p5 = por %p36_p2, %p35_p0  ;;  %p738_p6 = por %p42_p4, %p41_p3 }
   0xc   : > { %p149_p7 = scmp.eq.s32.totalorder %s716_s22, 1  ;;  %p155_p8 = scmp.eq.s32.totalorder %s489_s23, 1 }
   0xd   : > { %p518_p10 = scmp.lt.s32.totalorder %s661_s21, 2  ;;  %s187_s7 = sand.u32 1, %s657_s20  }
   0xe   : > { %p745_p11 = por %p149_p7, %p35_p0  ;;  %p749_p12 = por %p155_p8, %p41_p3 }
   0xf   : > { %s504_s8 = sshll.u32 %s661_s21, 3  ;;  %s492_s9 = sshll.u32 %s187_s7, 3 }
  0x10   : > { %s196_s12 = scalar_lea.hbm %s846_s0, %s504_s8  ;;  %s191_s14 = scalar_lea.vmem [#allocation2], %s492_s9 }
  0x11   : > { %s198_s13 = sshll.u32 %s196_s12, 4  ;;  %s200_s15 = sshll.u32 %s191_s14, 4  ;;  %s199_s13 = int_to_ptr.hbm [resolvable:$true] %s198_s13  ;;  %s201_s15 = int_to_ptr.vmem [resolvable:$true] %s200_s15 }
  0x12   : > { %p760_p13 = pnand %p518_p10, %p734_p5  ;;  %p495_p0 = scmp.ge.s32.totalorder %s661_s21, 1 }
  0x13   : > { %p205_p1 = scmp.lt.s32.totalorder %s661_s21, 3  ;;  %s188_s17 = scalar_lea.sflag [#allocation3], %s187_s7 }
  0x14   : > { %s565_s23 = sshra.s32 %s199_s13, 4  ;;  %p569_p3 = pneg %p760_p13  ;;  %s566_s23 = int_to_ptr.hbm [resolvable:$true] %s565_s23 }
  0x15   : > { %s567_s25 = scalar_lea.hbm %s566_s23, 8  ;;  %s572_s28 = scalar_lea.hbm %s846_s0, 16 }
  0x16   : > { %p568_p2 = scmp.ne.s32.totalorder %s566_s23, %s567_s25  ;;  %p573_p5 = scmp.lt.s32.totalorder %s566_s23, %s846_s0 }
  0x17   : > { %p574_p8 = scmp.lt.s32.totalorder %s572_s28, %s567_s25 }
  0x18   : > { %p570_p4 = pnand %p569_p3, %p568_p2 }
  0x19   : > { %p575_p10 = por %p574_p8, %p573_p5 }
  0x1a   : > { %p571_p7 = pneg %p570_p4 }
  0x1c   : > { %p576_p9 = pnand %p575_p10, %p571_p7 }
  0x1e   : > { %579 = shalt.err (!%p576_p9)
}
  0x1f   : > { %513 = dma.hbm_to_vmem [thread:$0]  (!%p760_p13), %s199_s13, 128, %s201_s15, %s188_s17  }
  0x20   : > { %p206_p2 = pnand %p495_p0, %p205_p1 }
  0x21   : > { %s781_s7 = sand.u32 (!%p206_p2), 1, %s653_s19  }
  0x22   : > { %209 = sbr.rel (%p206_p2) target bundleno = 930 (0x3a2), region = 40  ;;  %s496_s11 = sshll.u32 (!%p206_p2), %s781_s7, 3 }
  0x23   : > { %s212_s12 = scalar_lea.sflag (!%p206_p2), [#allocation3], %s781_s7  ;;  %s215_s14 = scalar_lea.vmem (!%p206_p2), [#allocation2], %s496_s11 }
  0x27   : > { %640 = dma.done.wait (%p738_p6), %s212_s12, 128  }
  0x28   : > { %642 = vsyncadd (%p738_p6), %s212_s12, 4294967168  ;;  %v791_v0 = vld [vmem:[%s215_s14] sm:$0xff]  ;;  %vm250_vm0 = vcmask 1043456   ;;  %v289_v37 = vld [vmem:[%s847_s1] sm:$0x3]  ;;  %vm324_vm5 = vcmask 25600  }
  0x29   : > { %245 = vst [vmem:[#allocation1] ss:$2 sm:$0xff] %v791_v0  ;;  %v328_v41 = vld [vmem:[%s848_s2] sm:$0x3]  ;;  %vm366_vm6 = vcmask 11264   ;;  %v663_v50 = vmov 0  }
  0x2a   : > { %v331_v46 = vld [vmem:[%s849_s3] sm:$0xf]  ;;  %555 = vset.pattern.permute.xlu2 %v663_v50  ;;  %s505_s8 = sshll.u32 %s716_s22, 3  ;;  %s242_s12 = scalar_lea.vmem [#allocation5], %s496_s11 }
  0x2b   : > { %v370_v51 = vld [vmem:[%s850_s4] sm:$0xf]  ;;  %s414_s10 = scalar_lea.hbm %s851_s5, %s505_s8  ;;  %s416_s14 = sshll.u32 %s242_s12, 4  ;;  %s417_s14 = int_to_ptr.vmem [resolvable:$true] %s416_s14 }
  0x2c   : > { %s418_s29 = sshll.u32 %s414_s10, 4  ;;  %s403_s13 = scalar_lea.sflag [#allocation4], %s781_s7  ;;  %s419_s29 = int_to_ptr.hbm [resolvable:$true] %s418_s29 }
  0x2d   : > { %s609_s15 = sshra.s32 %s419_s29, 4  ;;  %s615_s11 = scalar_lea.hbm %s851_s5, 16  ;;  %s610_s15 = int_to_ptr.hbm [resolvable:$true] %s609_s15 }
  0x2e   : > { %s611_s22 = scalar_lea.hbm %s610_s15, 8  ;;  %p616_p0 = scmp.lt.s32.totalorder %s610_s15, %s851_s5 }
  0x2f   : > { %p612_p6 = scmp.ne.s32.totalorder %s610_s15, %s611_s22  ;;  %p617_p1 = scmp.lt.s32.totalorder %s615_s11, %s611_s22 }
  0x30   : > { %v246_v1 = vld.sshfl [vmem:[#allocation1] sm:$0xff pattern:$0x75316420]  ;;  %v247_v2 = vld.sshfl [vmem:[#allocation1 + $0x8] sm:$0xff pattern:$0x75316420] }
  0x31   : > { %v251_v3 = vsel %vm250_vm0, %v246_v1, 0.0  ;;  %v252_v4 = vsel %vm250_vm0, %v247_v2, 0.0  ;;  %p613_p9 = pnand %p612_p6, %p745_p11  ;;  %p618_p3 = por %p617_p1, %p616_p0 }
  0x32   : > { %v253_v5 = vadd.f32 %v252_v4, %v251_v3  ;;  %v664_v4 = vmov 839922192  }
  0x33   : > { %p614_p13 = pneg %p613_p9 }
  0x34   : > { %254 = vadd.xlane.f32.xlu0 %v253_v5  ;;  %v396_v5 = vunpack.c.l.s4 %v664_v4 }
  0x35   : > { %p619_p4 = pnand %p618_p3, %p614_p13 }
  0xa7   : > { %v255_v6 = vpop.xlane.xlu0 %254 }
  0xa8   : > { %v256_v7 = vmul.f32 0.00390625, %v255_v6  ;;  %v397_v6 = vunpack.c.0.s8 %v396_v5 }
  0xaa   : > { %v257_v8 = vsel %vm250_vm0, %v256_v7, -inf }
  0xab   : > { %v258_v9 = vrot.slane %v257_v8, 4 }
  0xad   : > { %v259_v10 = vmax.f32 %v257_v8, %v258_v9 }
  0xaf   : > { %v260_v11 = vrot.slane %v259_v10, 2 }
  0xb1   : > { %v261_v12 = vmax.f32 %v259_v10, %v260_v11 }
  0xb3   : > { %v262_v13 = vrot.slane %v261_v12, 1 }
  0xb5   : > { %v263_v14 = vmax.f32 %v261_v12, %v262_v13 }
  0xb7   : > { %v264_v15 = vsub.f32 %v256_v7, %v263_v14 }
  0xb9   : > { %v265_v16 = vmul.f32 1.442695, %v264_v15 }
  0xbb   : > { %557 = vpow2.f32 %v265_v16 }
  0xc1   : > { %v558_v17 = vpop.eup %557 }
  0xc2   : > { %v267_v18 = vsel %vm250_vm0, %v558_v17, 0.0 }
  0xc3   : > { %v268_v19 = vrot.slane %v267_v18, 4 }
  0xc5   : > { %v269_v20 = vadd.f32 %v268_v19, %v267_v18 }
  0xc7   : > { %v270_v21 = vrot.slane %v269_v20, 2 }
  0xc9   : > { %v271_v22 = vadd.f32 %v270_v21, %v269_v20 }
  0xcb   : > { %v272_v23 = vrot.slane %v271_v22, 1 }
  0xcd   : > { %v273_v24 = vadd.f32 %v272_v23, %v271_v22 }
  0xcf   : > { %559 = vrcp.f32 %v273_v24  ;;  %v285_v28 = vand.u32 2147483648, %v273_v24  ;;  %v283_v30 = vand.u32 2147483647, %v273_v24  ;;  %vm279_vm2 = vweird.f32 %v273_v24 }
  0xd1   : > { %v286_v32 = vor.u32 1.1754944e-38, %v285_v28  ;;  %vm284_vm4 = vcmp.eq.f32.partialorder %v283_v30, 8.507059e+37 }
  0xd5   : > { %v560_v25 = vpop.eup %559 }
  0xd6   : > { %v275_v26 = vmul.f32 %v560_v25, %v273_v24  ;;  %vm280_vm1 = vweird.f32 %v560_v25 }
  0xd7   : > { %vm281_vm3 = vmor %vm279_vm2, %vm280_vm1 }
  0xd8   : > { %v276_v27 = vsub.f32 1.0, %v275_v26 }
  0xda   : > { %v277_v29 = vmul.f32 %v560_v25, %v276_v27 }
  0xdc   : > { %v278_v31 = vadd.f32 %v560_v25, %v277_v29 }
  0xde   : > { %v282_v33 = vsel %vm281_vm3, %v560_v25, %v278_v31 }
  0xdf   : > { %v287_v34 = vsel %vm284_vm4, %v286_v32, %v282_v33 }
  0xe0   : > { %v288_v35 = vmul.f32 %v558_v17, %v287_v34 }
  0xe2   : > { %290 = vxpose.xlu0.b32.start.end [1/1] (short) (narrow) %v288_v35, 8 }
 0x149   : > { %556 = vset.pattern.permute.xlu0 %v663_v50 }
 0x186   : > { %v306_v36 = vpop.trf.xlu0 }
 0x187   : > { %v322_v38 = vperm.slane %v306_v36, 0 }
 0x189   : > { %v323_v39 = vmul.f32 %v322_v38, %v289_v37 }
 0x18b   : > { %v325_v40 = vsel %vm324_vm5, %v323_v39, 0.0 }
 0x18c   : > { %326 = vadd.xlane.f32.xlu1 %v325_v40 }
 0x1ff   : > { %v327_v42 = vpop.xlane.xlu1 %326 }
 0x200   : > { %v329_v43 = vadd.f32 %v328_v41, %v327_v42 }
 0x202   : > { %v330_v44 = vmax.f32 %v329_v43, 0.0 }
 0x204   : > { %332 = vxpose.xlu1.b32.start.end [1/1] (short) (narrow) %v330_v44, 8 }
 0x2a8   : > { %v348_v45 = vpop.trf.xlu1 }
 0x2a9   : > { %v364_v47 = vperm.slane %v348_v45, 0 }
 0x2ab   : > { %v365_v48 = vmul.f32 %v364_v47, %v331_v46 }
 0x2ad   : > { %v367_v49 = vsel %vm366_vm6, %v365_v48, 0.0 }
 0x2ae   : > { %368 = vadd.xlane.f32.xlu2 %v367_v49 }
 0x321   : > { %v369_v52 = vpop.xlane.xlu2 %368 }
 0x322   : > { %v371_v53 = vadd.f32 %v370_v51, %v369_v52 }
 0x324   : > { %v498_v54 = vmul.f32 -1.442695, %v371_v53 }
 0x326   : > { %561 = vpow2.f32 %v498_v54 }
 0x32c   : > { %v562_v55 = vpop.eup %561 }
 0x32d   : > { %v375_v56 = vadd.f32 1.0, %v562_v55 }
 0x32f   : > { %563 = vrcp.f32 %v375_v56  ;;  %v387_v60 = vand.u32 2147483648, %v375_v56  ;;  %v385_v62 = vand.u32 2147483647, %v375_v56  ;;  %vm381_vm8 = vweird.f32 %v375_v56 }
 0x331   : > { %v388_v1 = vor.u32 1.1754944e-38, %v387_v60  ;;  %vm386_vm10 = vcmp.eq.f32.partialorder %v385_v62, 8.507059e+37 }
 0x335   : > { %v564_v57 = vpop.eup %563 }
 0x336   : > { %v377_v58 = vmul.f32 %v564_v57, %v375_v56  ;;  %vm382_vm7 = vweird.f32 %v564_v57 }
 0x337   : > { %vm383_vm9 = vmor %vm381_vm8, %vm382_vm7 }
 0x338   : > { %v378_v59 = vsub.f32 1.0, %v377_v58 }
 0x33a   : > { %v379_v61 = vmul.f32 %v564_v57, %v378_v59 }
 0x33c   : > { %v380_v63 = vadd.f32 %v564_v57, %v379_v61 }
 0x33e   : > { %v384_v2 = vsel %vm383_vm9, %v564_v57, %v380_v63 }
 0x33f   : > { %v389_v3 = vsel %vm386_vm10, %v388_v1, %v384_v2 }
 0x340   : > { %393 = vperm.xlu2 %555, %v389_v3  }
 0x39a   : > { %v394_v7 = vpop.permute.xlu2 %393 }
 0x39b   : > { %v398_v8 = vperm.slane %v394_v7, %v397_v6 }
 0x39d   : > { %v400_v9 = vmul.f32 %v398_v8, %v791_v0 }
 0x39f   : > { %401 = vst [vmem:[%s242_s12] sm:$0xff] %v400_v9 }
 0x3a0   : > { %622 = shalt.err (!%p619_p4)
}
 0x3a1   : > { %508 = dma.vmem_to_hbm [thread:$0]  (%p745_p11), %s417_s14, 128, %s419_s29, %s403_s13  }
 0x3a2 PF: > { %s430_s7 = sand.u32 1, %s649_s18   ;;  %p857_p7 = scmp.ge.s32.totalorder %s661_s21, 2 }
 0x3a3   : > { %s431_s26 = scalar_lea.sflag [#allocation4], %s430_s7 }
 0x3a4   : > { %p515_p5 = pnand %p857_p7, %p749_p12 }
 0x3a6   : > { %p516_p8 = pneg %p515_p5 }
 0x3a8   : > { %644 = dma.done.wait (%p516_p8), %s431_s26, 128  }
 0x3a9   : > { %646 = vsyncadd (%p516_p8), %s431_s26, 4294967168  ;;  %p18_p10 = scmp.ge.s32.totalorder %s720_s24, 4   ;;  %s858_s18 = smov %s653_s19 }
 0x3aa   : > { %s859_s19 = smov %s657_s20  ;;  %s860_s20 = smov %s732_s27 }
 0x3ab   : > { %s861_s21 = smov %s720_s24  ;;  %20 = sbr.rel (!%p18_p10) target bundleno = 5 (0x5), region = 85 }
 0x3b0   :  { %437 = vsyncpa [#allocation3], 1 }
 0x3b1   :  { %439 = vsyncpa [#allocation3 + $0x1], 1 }
 0x3b2   :  { %440 = vsyncpa [#allocation4], 1 }
 0x3b3   :  { %442 = vsyncpa [#allocation4 + $0x1], 1 }

</bundles_post_ra>
